<compile_context>
chip_gen: v7x
topology: tpu7x:2x2x1
jax: 0.10.0
libtpu: 0.0.40
codegen_flags: <defaults>
</compile_context>

<pallas_src>
import math

import jax
import jax.numpy as jnp
from jax import lax
from jax.experimental import pallas as pl
from jax.experimental.pallas import tpu as pltpu


def _decode_kernel(x_ref, w_ref, b_ref, o_ref, acc_ref):
    """One (TM, TN) output tile; d_model reduction runs on grid axis 2.

    x_ref : [TM, TK]  activation tile
    w_ref : [TN, TK]  weight tile (PyTorch [vocab, d_model] layout, untransposed)
    b_ref : [1,  TN]  bias tile
    o_ref : [TM, TN]  output tile (resident across the reduction axis)
    acc_ref: [TM, TN] f32 VMEM accumulator scratch
    """
    k = pl.program_id(2)

    @pl.when(k == 0)
    def _init():
        acc_ref[...] = jnp.zeros_like(acc_ref)

    # x @ W.T contracted on the d_model axis of both operands (MXU, f32 accum).
    acc_ref[...] += lax.dot_general(
        x_ref[...], w_ref[...],
        dimension_numbers=(((1,), (1,)), ((), ())),
        preferred_element_type=jnp.float32,
    )

    @pl.when(k == pl.num_programs(2) - 1)
    def _finalize():
        o_ref[...] = (acc_ref[...] + b_ref[...].astype(jnp.float32)).astype(o_ref.dtype)


def _pick_tiles(n, d_model, vocab, *, tm_max=256, tn_max=512, tk_max=2048):
    # Token tile: multiple of 8 (sublane) unless the whole axis fits one block.
    tm = n if n <= tm_max else tm_max
    # Vocab tile: lane axis of the output -> multiple of 128 when tiled.
    tn = vocab if vocab <= tn_max else tn_max
    # Reduction tile: exact divisor of d_model so no padding enters the contraction.
    if d_model % 128 == 0 and d_model > tk_max:
        tk = next(c for c in (2048, 1024, 512, 256, 128) if d_model % c == 0)
    else:
        tk = d_model
    return tm, tn, tk


def decoder_forward(x, weight, bias):
    """Equivalent of nn.Linear(d_model, vocab_size): y = x @ weight.T + bias.

    x:      [..., d_model]
    weight: [vocab, d_model]  (PyTorch layout, used as-is — never transposed)
    bias:   [vocab]
    """
    d_model = x.shape[-1]
    vocab, d_model_w = weight.shape
    assert d_model_w == d_model, "weight must be [vocab, d_model]"
    lead = x.shape[:-1]
    n = math.prod(lead) if lead else 1

    x2d = x.reshape(n, d_model)
    b2d = bias.reshape(1, vocab)

    tm, tn, tk = _pick_tiles(n, d_model, vocab)
    grid = (pl.cdiv(n, tm), pl.cdiv(vocab, tn), pl.cdiv(d_model, tk))

    out_dtype = x.dtype
    cost = pl.CostEstimate(
        flops=2 * n * d_model * vocab,
        transcendentals=0,
        bytes_accessed=(
            x2d.size * x2d.dtype.itemsize
            + weight.size * weight.dtype.itemsize
            + bias.size * bias.dtype.itemsize
            + n * vocab * jnp.dtype(out_dtype).itemsize
        ),
    )

    out = pl.pallas_call(
        _decode_kernel,
        out_shape=jax.ShapeDtypeStruct((n, vocab), out_dtype),
        grid=grid,
        in_specs=[
            pl.BlockSpec((tm, tk), lambda i, j, k: (i, k)),   # activations
            pl.BlockSpec((tn, tk), lambda i, j, k: (j, k)),   # weight [vocab, d_model]
            pl.BlockSpec((1, tn), lambda i, j, k: (0, j)),    # bias
        ],
        out_specs=pl.BlockSpec((tm, tn), lambda i, j, k: (i, j)),
        scratch_shapes=[pltpu.VMEM((tm, tn), jnp.float32)],
        compiler_params=pltpu.CompilerParams(
            # N and vocab tiles are independent -> shard across TCs on v7x;
            # d_model is the reduction -> arbitrary (accumulator resident).
            dimension_semantics=("parallel", "parallel", "arbitrary"),
            # <= 48 MiB leaves headroom inside v7x's 64 MiB physical VMEM;
            # plenty on v5e/v6e (128 MiB).
            vmem_limit_bytes=48 << 20,
        ),
        cost_estimate=cost,
    )(x2d, weight, b2d)

    return out.reshape(*lead, vocab)


if __name__ == "__main__":
    # Small shapes implied by the module: x [batch, seq, d_model]
    batch, seq, d_model, vocab_size = 2, 8, 32, 64

    key = jax.random.PRNGKey(0)
    kx, kw, kb = jax.random.split(key, 3)

    x = jax.random.normal(kx, (batch, seq, d_model), dtype=jnp.float32)
    # Deterministic init mimicking nn.Linear's uniform(-1/sqrt(in), 1/sqrt(in))
    bound = 1.0 / (d_model ** 0.5)
    weight = jax.random.uniform(kw, (vocab_size, d_model), jnp.float32, -bound, bound)
    bias = jax.random.uniform(kb, (vocab_size,), jnp.float32, -bound, bound)

    y = decoder_forward(x, weight, bias)
    y = jax.block_until_ready(y)

    # Correctness check against plain-JAX reference of nn.Linear semantics.
    y_ref = x @ weight.T + bias
    assert y.shape == (batch, seq, vocab_size)
    assert jnp.allclose(y, y_ref, atol=1e-5, rtol=1e-5)

    print("KERNEL_OK")
</pallas_src>

<mosaic_0001>
module attributes {stable_mosaic.version = 11 : i64} {
  func.func @_decode_kernel(%arg0: i32, %arg1: i32, %arg2: i32, %arg3: memref<16x32xf32, #tpu.memory_space<vmem>>, %arg4: memref<64x32xf32, #tpu.memory_space<vmem>>, %arg5: memref<1x64xf32, #tpu.memory_space<vmem>>, %arg6: memref<16x64xf32, #tpu.memory_space<vmem>>, %arg7: memref<16x64xf32, #tpu.memory_space<vmem>>) attributes {dimension_semantics = [#tpu.dimension_semantics<parallel>, #tpu.dimension_semantics<parallel>, #tpu.dimension_semantics<arbitrary>], iteration_bounds = array<i64: 1, 1, 1>, scalar_prefetch = 0 : i64, scratch_operands = 1 : i64, tpu.core_type = #tpu.core_type<tc>, window_params = [{transform_indices = @transform_0, window_bounds = array<i64: 16, 32>}, {transform_indices = @transform_1, window_bounds = array<i64: 64, 32>}, {transform_indices = @transform_2, window_bounds = array<i64: 1, 64>}, {transform_indices = @transform_3, window_bounds = array<i64: 16, 64>}]} {
    %c0_i32 = arith.constant 0 : i32
    %0 = arith.cmpi eq, %arg2, %c0_i32 : i32
    %1 = arith.extui %0 : i1 to i32
    %c0_i32_0 = arith.constant 0 : i32
    %2 = arith.cmpi ne, %1, %c0_i32_0 : i32
    scf.if %2 {
      %cst_10 = arith.constant 0.000000e+00 : f32
      %12 = vector.broadcast %cst_10 : f32 to vector<16x64xf32>
      %c0_11 = arith.constant 0 : index
      %c0_12 = arith.constant 0 : index
      %13 = vector.load %arg7[%c0_11, %c0_12] : memref<16x64xf32, #tpu.memory_space<vmem>>, vector<16x64xf32>
      tpu.vector_store %arg7[%c0_11, %c0_12], %12 {strides = array<i32>} : memref<16x64xf32, #tpu.memory_space<vmem>>, vector<16x64xf32>,
    } else {
    }
    %c0 = arith.constant 0 : index
    %c0_1 = arith.constant 0 : index
    %3 = vector.load %arg7[%c0, %c0_1] : memref<16x64xf32, #tpu.memory_space<vmem>>, vector<16x64xf32>
    %c0_2 = arith.constant 0 : index
    %c0_3 = arith.constant 0 : index
    %4 = vector.load %arg3[%c0_2, %c0_3] : memref<16x32xf32, #tpu.memory_space<vmem>>, vector<16x32xf32>
    %c0_4 = arith.constant 0 : index
    %c0_5 = arith.constant 0 : index
    %5 = vector.load %arg4[%c0_4, %c0_5] : memref<64x32xf32, #tpu.memory_space<vmem>>, vector<64x32xf32>
    %cst = arith.constant dense<0.000000e+00> : vector<16x64xf32>
    %6 = tpu.matmul %4, %5, %cst {dimension_numbers = #tpu.dot_dimension_numbers<[1], [1], [0], [0], [0, 0, 1, 0], [], []>} : vector<16x32xf32>, vector<64x32xf32>, vector<16x64xf32> -> vector<16x64xf32>
    %7 = arith.addf %3, %6 : vector<16x64xf32>
    %c0_6 = arith.constant 0 : index
    %c0_7 = arith.constant 0 : index
    %8 = vector.load %arg7[%c0_6, %c0_7] : memref<16x64xf32, #tpu.memory_space<vmem>>, vector<16x64xf32>
    tpu.vector_store %arg7[%c0_6, %c0_7], %7 {strides = array<i32>} : memref<16x64xf32, #tpu.memory_space<vmem>>, vector<16x64xf32>,
    %c0_i32_8 = arith.constant 0 : i32
    %9 = arith.cmpi eq, %arg2, %c0_i32_8 : i32
    %10 = arith.extui %9 : i1 to i32
    %c0_i32_9 = arith.constant 0 : i32
    %11 = arith.cmpi ne, %10, %c0_i32_9 : i32
    scf.if %11 {
      %c0_10 = arith.constant 0 : index
      %c0_11 = arith.constant 0 : index
      %12 = vector.load %arg7[%c0_10, %c0_11] : memref<16x64xf32, #tpu.memory_space<vmem>>, vector<16x64xf32>
      %c0_12 = arith.constant 0 : index
      %c0_13 = arith.constant 0 : index
      %13 = vector.load %arg5[%c0_12, %c0_13] : memref<1x64xf32, #tpu.memory_space<vmem>>, vector<1x64xf32>
      %14 = vector.broadcast %13 : vector<1x64xf32> to vector<16x64xf32>
      %15 = arith.addf %12, %14 : vector<16x64xf32>
      %c0_14 = arith.constant 0 : index
      %c0_15 = arith.constant 0 : index
      %16 = vector.load %arg6[%c0_14, %c0_15] : memref<16x64xf32, #tpu.memory_space<vmem>>, vector<16x64xf32>
      tpu.vector_store %arg6[%c0_14, %c0_15], %15 {strides = array<i32>} : memref<16x64xf32, #tpu.memory_space<vmem>>, vector<16x64xf32>,
    } else {
    }
    return
  }
  func.func @transform_0(%arg0: i32, %arg1: i32, %arg2: i32) -> (i32, i32) {
    %c0_i32 = arith.constant 0 : i32
    return %arg0, %arg2 : i32, i32
  }
  func.func @transform_1(%arg0: i32, %arg1: i32, %arg2: i32) -> (i32, i32) {
    %c0_i32 = arith.constant 0 : i32
    return %arg1, %arg2 : i32, i32
  }
  func.func @transform_2(%arg0: i32, %arg1: i32, %arg2: i32) -> (i32, i32) {
    %c0_i32 = arith.constant 0 : i32
    %c0_i32_0 = arith.constant 0 : i32
    return %c0_i32, %arg1 : i32, i32
  }
  func.func @transform_3(%arg0: i32, %arg1: i32, %arg2: i32) -> (i32, i32) {
    %c0_i32 = arith.constant 0 : i32
    return %arg0, %arg1 : i32, i32
  }
}

</mosaic_0001>

<bundles_post_ra>
// kernel: tpu_custom_call.1
= control target key start
LH: loop header
LB: loop body
LE: loop exit
PB: predicated region body
PF: predicated region fallthrough
CT: control target
= control target key end

     0   :  { %vm34_vm0 = vcmask 261120   ;;  %vm19_vm1 = vcmask 523264   ;;  %v269_v6 = vmov 0.0   ;;  %s368_s0 = inlined_call_operand.vmem [shape: f32[16,32], index: 0, kind: input, shape index: {}]   ;;  %s369_s1 = inlined_call_operand.vmem [shape: f32[64,32], index: 1, kind: input, shape index: {}]   ;;  %s370_s2 = inlined_call_operand.vmem [shape: f32[1,64], index: 2, kind: input, shape index: {}]   ;;  %s371_s3 = inlined_call_operand.hbm [shape: f32[16,64], index: 3, kind: output, shape index: {}]  }
   0x1   :  { %v26_v0 = vld [vmem:[%s369_s1] sm:$0xff]  ;;  %v27_v1 = vld [vmem:[%s369_s1 + $0x8] sm:$0xff]  ;;  %v28_v2 = vld [vmem:[%s369_s1 + $0x10] sm:$0xff]  ;;  %21 = vst.msk [vmem:[#allocation2 + $0x8] sm:$0xff] %vm19_vm1, %v269_v6 }
   0x2   :  { %v217_v3 = vpack.c.bf16 %v27_v1, %v26_v0  ;;  %vm304_vm2 = vmpackc.low %vm34_vm0, %vm34_vm0  ;;  %v29_v5 = vld [vmem:[%s369_s1 + $0x18] sm:$0xff]  ;;  %20 = vst.msk [vmem:[#allocation2] sm:$0xff] %vm19_vm1, %v269_v6  ;;  %v24_v8 = vld [vmem:[%s368_s0] sm:$0xff] }
   0x3   :  { %v223_v7 = vpack.c.bf16 %v29_v5, %v28_v2 }
   0x4   :  { %219 = vmatprep.subr.msk.bf16.mxu0 %vm304_vm2, %v217_v3 }
   0x5   :  { %8 = vsyncpa [#allocation4], 0  ;;  %222 = vmatpush3.bf16.xpose.msk.msra.mxu0 %vm304_vm2, %v217_v3  ;;  %214 = vmatprep.mubr.msk.f32.mxu0 %vm34_vm0, %v24_v8  ;;  %v30_v9 = vld [vmem:[%s369_s1 + $0x20] sm:$0xff]  ;;  %v31_v10 = vld [vmem:[%s369_s1 + $0x28] sm:$0xff]  ;;  %s270_s6 = smov [#allocation3]  }
   0x6   :  { %225 = vmatprep.subr.msk.bf16.mxu0 %vm304_vm2, %v223_v7  ;;  %v229_v11 = vpack.c.bf16 %v31_v10, %v30_v9  ;;  %v32_v12 = vld [vmem:[%s369_s1 + $0x30] sm:$0xff]  ;;  %v33_v13 = vld [vmem:[%s369_s1 + $0x38] sm:$0xff]  ;;  %v25_v15 = vld [vmem:[%s368_s0 + $0x8] sm:$0xff]  ;;  %s166_s7 = sshll.u32 %s270_s6, 4  ;;  %s167_s7 = int_to_ptr.vmem [resolvable:$true] %s166_s7 }
   0x7   :  { %v235_v14 = vpack.c.bf16 %v33_v13, %v32_v12  ;;  %v187_v22 = vld [vmem:[%s370_s2] ss:$0 sm:$0xff]  ;;  %s245_s0 = scalar_lea.vmem %s167_s7, 256  ;;  %p250_p1 = scmp.lt.s32.totalorder %s167_s7, %s167_s7 }
   0x8   :  { %v23_v16 = vld [vmem:[#allocation2 + $0x8] sm:$0xff]  ;;  %p246_p0 = scmp.ne.s32.totalorder %s167_s7, %s245_s0  ;;  %p251_p2 = scmp.lt.s32.totalorder %s245_s0, %s245_s0 }
   0x9   :  { %v22_v17 = vld [vmem:[#allocation2] sm:$0xff] }
   0xa   :  { %p252_p3 = por %p251_p2, %p250_p1 }
   0xc   :  { %p253_p4 = pnand %p252_p3, %p246_p0 }
   0xd   :  { %228 = vmatpush3.bf16.xpose.msk.msra.mxu0 %vm304_vm2, %v223_v7 }
   0xe   :  { %231 = vmatprep.subr.msk.bf16.mxu0 %vm304_vm2, %v229_v11 }
  0x15   :  { %234 = vmatpush3.bf16.xpose.msk.msra.mxu0 %vm304_vm2, %v229_v11 }
  0x16   :  { %237 = vmatprep.subr.msk.bf16.mxu0 %vm304_vm2, %v235_v14 }
  0x1d   :  { %240 = vmatpush3.bf16.xpose.msk.msra.mxu0 %vm304_vm2, %v235_v14 }
  0x24   :  { %215 = vmatmul.mubr.msk.f32.vlgmr.msra.gmra.mrb[0].mxu0 %vm34_vm0, %v25_v15 }
  0xf7   :  { %v216_v18 = vpop.f32.mrb[0].mxu0 }
  0xf8   :  { %v141_v19 = vadd.f32 %v216_v18, %v23_v16  ;;  %v131_v20 = vpop.f32.mrb[1].mxu0 }
  0xf9   :  { %v140_v21 = vadd.f32 %v131_v20, %v22_v17 }
  0xfa   :  { %144 = vst.msk [vmem:[#allocation2 + $0x8] sm:$0xff] %vm19_vm1, %v141_v19 }
  0xfb   :  { %143 = vst.msk [vmem:[#allocation2] sm:$0xff] %vm19_vm1, %v140_v21 }
 0x101   :  { %v149_v23 = vld [vmem:[#allocation2 + $0x8] sm:$0xff] }
 0x102   :  { %v148_v24 = vld [vmem:[#allocation2] sm:$0xff]  ;;  %v158_v25 = vadd.f32 %v187_v22, %v149_v23 }
 0x103   :  { %v157_v26 = vadd.f32 %v187_v22, %v148_v24 }
 0x104   :  { %160 = vst.msk [vmem:[#allocation3 + $0x8] sm:$0xff] %vm19_vm1, %v158_v25 }
 0x105   :  { %159 = vst.msk [vmem:[#allocation3] sm:$0xff] %vm19_vm1, %v157_v26 }
 0x106   :  { %256 = shalt.err (!%p253_p4)
}
 0x107   :  { %s257_s9 = scalar_lea.hbm %s371_s3, 256 }
 0x108   :  { %p258_p5 = scmp.ne.s32.totalorder %s371_s3, %s257_s9  ;;  %p261_p6 = scmp.lt.u32.totalorder %s257_s9, %s371_s3 }
 0x10a   :  { %p263_p7 = pnand %p261_p6, %p258_p5 }
 0x10c   :  { %266 = shalt.err (!%p263_p7)
}
 0x10d   :  { %s271_s14 = smov 128   ;;  %s272_s15 = smov 8  }
 0x10e   :  { %172 = dma.vmem_to_hbm [thread:$0]  %s167_s7, 256, %s371_s3, [#allocation4], %s271_s14, %s271_s14, %s272_s15  }
 0x10f   :  { %267 = dma.done.wait [#allocation4], 256  }
 0x110   :  { %268 = vsyncadd [#allocation4], 4294967040 }
 0x111   :  { %176 = vsyncpa [#allocation4], 1 }

</bundles_post_ra>
